<compile_context>
chip_gen: v5e
topology: v5e:2x2
jax: 0.10.0
libtpu: 0.0.40
codegen_flags: <defaults>
</compile_context>

<pallas_src>
import functools

import jax
import jax.numpy as jnp
from jax.experimental import pallas as pl
from jax.experimental.pallas import tpu as pltpu

_LANE = 128
_SUBLANE = 8


def _round_up(x: int, m: int) -> int:
    return (x + m - 1) // m * m


def _make_kernel(batch_real: int, tb: int):
    """Build the fused encoder/decoder kernel (static batch-mask decision)."""

    def kernel(x_ref, we_ref, be_ref, wd_ref, bd_ref, xhat_ref, zabs_ref, acc_ref):
        h = pl.program_id(1)

        @pl.when(h == 0)
        def _init():
            acc_ref[...] = jnp.zeros_like(acc_ref)

        # z_tile = x @ W_enc[:, h_tile] + b_enc[h_tile]     (TB, TH), f32 accum on MXU
        z = jnp.dot(x_ref[...], we_ref[...], preferred_element_type=jnp.float32)
        z = z + be_ref[...]

        # Accumulate decoder contribution of this H-tile on-chip.
        acc_ref[...] += jnp.dot(
            z.astype(wd_ref.dtype), wd_ref[...], preferred_element_type=jnp.float32
        )

        # Sparsity-loss partial: sum over the batch tile of |z| (lane-dense (1, TH)).
        zabs = jnp.abs(z)
        if batch_real % tb != 0:
            # Padded batch rows carry z == b_enc; mask them out of the loss.
            rows = (
                jax.lax.broadcasted_iota(jnp.int32, zabs.shape, 0)
                + pl.program_id(0) * tb
            )
            zabs = jnp.where(rows < batch_real, zabs, 0.0)
        zabs_ref[...] = jnp.sum(zabs, axis=0, keepdims=True)

        # Finalize: add decoder bias once and store x_hat for this batch tile.
        @pl.when(h == pl.num_programs(1) - 1)
        def _finalize():
            xhat_ref[...] = (acc_ref[...] + bd_ref[...]).astype(xhat_ref.dtype)

    return kernel


def prepare_params(w_enc, b_enc, w_dec, b_dec, dtype=jnp.float32):
    """One-time weight prep: transpose to (in, out), lane-pad to 128, cast.

    w_enc: (H, D) torch layout, b_enc: (H,), w_dec: (D, H), b_dec: (D,).
    """
    H, D = w_enc.shape
    D_pad = _round_up(D, _LANE)
    H_pad = _round_up(H, _LANE)
    # Hidden-tile size (reduction axis). Modest default keeps double-buffered
    # weight tiles comfortably inside v7x's 64 MiB VMEM; v6e/v5e have headroom.
    TH = min(256, H_pad)
    H_pad = _round_up(H_pad, TH)

    we = jnp.zeros((D_pad, H_pad), dtype).at[:D, :H].set(
        jnp.transpose(w_enc).astype(dtype)
    )
    wd = jnp.zeros((H_pad, D_pad), dtype).at[:H, :D].set(
        jnp.transpose(w_dec).astype(dtype)
    )
    be = jnp.zeros((1, H_pad), jnp.float32).at[0, :H].set(b_enc.astype(jnp.float32))
    bd = jnp.zeros((1, D_pad), jnp.float32).at[0, :D].set(b_dec.astype(jnp.float32))
    return {"we": we, "be": be, "wd": wd, "bd": bd, "D": D, "H": H, "TH": TH}


def sparse_encoder_forward(x, params):
    """x: (B, D). Returns (x_hat (B, D), sparsity_loss scalar)."""
    B, D = x.shape
    we, be, wd, bd = params["we"], params["be"], params["wd"], params["bd"]
    D_pad, H_pad = we.shape
    TH = params["TH"]
    H = params["H"]
    assert D == params["D"], "input_dim mismatch with prepared params"

    # Batch tiling: sublane-aligned, capped so tiles stay VMEM-friendly.
    TB = min(256, _round_up(B, _SUBLANE))
    B_pad = _round_up(B, TB)

    x_pad = x
    if (B_pad, D_pad) != (B, D):
        x_pad = jnp.zeros((B_pad, D_pad), x.dtype).at[:B, :D].set(x)

    nb = B_pad // TB
    nh = H_pad // TH

    kernel = _make_kernel(B, TB)

    x_hat_pad, zabs_partials = pl.pallas_call(
        kernel,
        out_shape=(
            jax.ShapeDtypeStruct((B_pad, D_pad), x.dtype),
            jax.ShapeDtypeStruct((nb, H_pad), jnp.float32),
        ),
        grid_spec=pltpu.PrefetchScalarGridSpec(
            num_scalar_prefetch=0,
            grid=(nb, nh),
            in_specs=[
                pl.BlockSpec((TB, D_pad), lambda i, h: (i, 0)),   # x (resident over h)
                pl.BlockSpec((D_pad, TH), lambda i, h: (0, h)),   # W_enc tile
                pl.BlockSpec((1, TH), lambda i, h: (0, h)),       # b_enc tile
                pl.BlockSpec((TH, D_pad), lambda i, h: (h, 0)),   # W_dec tile
                pl.BlockSpec((1, D_pad), lambda i, h: (0, 0)),    # b_dec (resident)
            ],
            out_specs=(
                pl.BlockSpec((TB, D_pad), lambda i, h: (i, 0)),   # x_hat (accumulated)
                pl.BlockSpec((1, TH), lambda i, h: (i, h)),       # |z| partial sums
            ),
            scratch_shapes=[pltpu.VMEM((TB, D_pad), jnp.float32)],  # decoder accumulator
        ),
        compiler_params=pltpu.CompilerParams(
            dimension_semantics=("parallel", "arbitrary"),
            vmem_limit_bytes=48 * 1024 * 1024,
        ),
    )(x_pad, we, be, wd, bd)

    x_hat = x_hat_pad[:B, :D]
    # Padded H columns / padded batch rows contribute exactly zero to the sum.
    sparsity_loss = jnp.sum(zabs_partials) / (B * H)
    return x_hat, sparsity_loss


def _init_linear(key, out_features, in_features):
    # Deterministic init mimicking nn.Linear's uniform(-1/sqrt(in), 1/sqrt(in)).
    kw, kb = jax.random.split(key)
    bound = 1.0 / (in_features ** 0.5)
    w = jax.random.uniform(kw, (out_features, in_features), jnp.float32,
                           minval=-bound, maxval=bound)
    b = jax.random.uniform(kb, (out_features,), jnp.float32,
                           minval=-bound, maxval=bound)
    return w, b


if __name__ == "__main__":
    input_dim = 32
    hidden_dim = 16
    batch = 8

    key = jax.random.PRNGKey(0)
    k_x, k_enc, k_dec = jax.random.split(key, 3)

    x = jax.random.normal(k_x, (batch, input_dim), jnp.float32)
    w_enc, b_enc = _init_linear(k_enc, hidden_dim, input_dim)   # encoder: Linear(D, H)
    w_dec, b_dec = _init_linear(k_dec, input_dim, hidden_dim)   # decoder: Linear(H, D)

    params = prepare_params(w_enc, b_enc, w_dec, b_dec, dtype=jnp.float32)

    x_hat, sparsity_loss = sparse_encoder_forward(x, params)
    x_hat = jax.block_until_ready(x_hat)
    sparsity_loss = jax.block_until_ready(sparsity_loss)

    # Pure-JAX reference check.
    z_ref = x @ w_enc.T + b_enc
    x_hat_ref = z_ref @ w_dec.T + b_dec
    loss_ref = jnp.mean(jnp.abs(z_ref))
    assert jnp.allclose(x_hat, x_hat_ref, atol=2e-5, rtol=1e-5), (
        float(jnp.max(jnp.abs(x_hat - x_hat_ref))))
    assert jnp.allclose(sparsity_loss, loss_ref, atol=1e-6, rtol=1e-5), (
        float(sparsity_loss), float(loss_ref))

    print("KERNEL_OK")
</pallas_src>

<mosaic_0001>
module attributes {stable_mosaic.version = 11 : i64} {
  func.func @kernel(%arg0: i32, %arg1: i32, %arg2: memref<8x128xf32, #tpu.memory_space<vmem>>, %arg3: memref<128x128xf32, #tpu.memory_space<vmem>>, %arg4: memref<1x128xf32, #tpu.memory_space<vmem>>, %arg5: memref<128x128xf32, #tpu.memory_space<vmem>>, %arg6: memref<1x128xf32, #tpu.memory_space<vmem>>, %arg7: memref<8x128xf32, #tpu.memory_space<vmem>>, %arg8: memref<1x128xf32, #tpu.memory_space<vmem>>, %arg9: memref<8x128xf32, #tpu.memory_space<vmem>>) attributes {dimension_semantics = [#tpu.dimension_semantics<parallel>, #tpu.dimension_semantics<arbitrary>], iteration_bounds = array<i64: 1, 1>, scalar_prefetch = 0 : i64, scratch_operands = 1 : i64, tpu.core_type = #tpu.core_type<tc>, window_params = [{transform_indices = @transform_0, window_bounds = array<i64: 8, 128>}, {transform_indices = @transform_1, window_bounds = array<i64: 128, 128>}, {transform_indices = @transform_2, window_bounds = array<i64: 1, 128>}, {transform_indices = @transform_3, window_bounds = array<i64: 128, 128>}, {pipeline_mode = #tpu.pipeline_mode<synchronous>, transform_indices = @transform_4, window_bounds = array<i64: 1, 128>}, {transform_indices = @transform_5, window_bounds = array<i64: 8, 128>}, {transform_indices = @transform_6, window_bounds = array<i64: 1, 128>}]} {
    %c0_i32 = arith.constant 0 : i32
    %0 = arith.cmpi eq, %arg1, %c0_i32 : i32
    %1 = arith.extui %0 : i1 to i32
    %c0_i32_0 = arith.constant 0 : i32
    %2 = arith.cmpi ne, %1, %c0_i32_0 : i32
    scf.if %2 {
      %cst_18 = arith.constant 0.000000e+00 : f32
      %21 = vector.broadcast %cst_18 : f32 to vector<8x128xf32>
      %c0_19 = arith.constant 0 : index
      %c0_20 = arith.constant 0 : index
      %22 = vector.load %arg9[%c0_19, %c0_20] : memref<8x128xf32, #tpu.memory_space<vmem>>, vector<8x128xf32>
      tpu.vector_store %arg9[%c0_19, %c0_20], %21 {strides = array<i32>} : memref<8x128xf32, #tpu.memory_space<vmem>>, vector<8x128xf32>,
    } else {
    }
    %c0 = arith.constant 0 : index
    %c0_1 = arith.constant 0 : index
    %3 = vector.load %arg2[%c0, %c0_1] : memref<8x128xf32, #tpu.memory_space<vmem>>, vector<8x128xf32>
    %c0_2 = arith.constant 0 : index
    %c0_3 = arith.constant 0 : index
    %4 = vector.load %arg3[%c0_2, %c0_3] : memref<128x128xf32, #tpu.memory_space<vmem>>, vector<128x128xf32>
    %cst = arith.constant dense<0.000000e+00> : vector<8x128xf32>
    %5 = tpu.matmul %3, %4, %cst {dimension_numbers = #tpu.dot_dimension_numbers<[1], [0], [0], [1], [0, 0, 1, 1], [], []>} : vector<8x128xf32>, vector<128x128xf32>, vector<8x128xf32> -> vector<8x128xf32>
    %c0_4 = arith.constant 0 : index
    %c0_5 = arith.constant 0 : index
    %6 = vector.load %arg4[%c0_4, %c0_5] : memref<1x128xf32, #tpu.memory_space<vmem>>, vector<1x128xf32>
    %7 = vector.broadcast %6 : vector<1x128xf32> to vector<8x128xf32>
    %8 = arith.addf %5, %7 : vector<8x128xf32>
    %c0_6 = arith.constant 0 : index
    %c0_7 = arith.constant 0 : index
    %9 = vector.load %arg9[%c0_6, %c0_7] : memref<8x128xf32, #tpu.memory_space<vmem>>, vector<8x128xf32>
    %c0_8 = arith.constant 0 : index
    %c0_9 = arith.constant 0 : index
    %10 = vector.load %arg5[%c0_8, %c0_9] : memref<128x128xf32, #tpu.memory_space<vmem>>, vector<128x128xf32>
    %cst_10 = arith.constant dense<0.000000e+00> : vector<8x128xf32>
    %11 = tpu.matmul %8, %10, %cst_10 {dimension_numbers = #tpu.dot_dimension_numbers<[1], [0], [0], [1], [0, 0, 1, 1], [], []>} : vector<8x128xf32>, vector<128x128xf32>, vector<8x128xf32> -> vector<8x128xf32>
    %12 = arith.addf %9, %11 : vector<8x128xf32>
    %c0_11 = arith.constant 0 : index
    %c0_12 = arith.constant 0 : index
    %13 = vector.load %arg9[%c0_11, %c0_12] : memref<8x128xf32, #tpu.memory_space<vmem>>, vector<8x128xf32>
    tpu.vector_store %arg9[%c0_11, %c0_12], %12 {strides = array<i32>} : memref<8x128xf32, #tpu.memory_space<vmem>>, vector<8x128xf32>,
    %14 = math.absf %8 : vector<8x128xf32>
    %cst_13 = arith.constant dense<0.000000e+00> : vector<128xf32>
    %15 = vector.multi_reduction <add>, %14, %cst_13 [0] : vector<8x128xf32> to vector<128xf32>
    %16 = vector.shape_cast %15 : vector<128xf32> to vector<1x128xf32>
    %c0_14 = arith.constant 0 : index
    %c0_15 = arith.constant 0 : index
    %17 = vector.load %arg8[%c0_14, %c0_15] : memref<1x128xf32, #tpu.memory_space<vmem>>, vector<1x128xf32>
    tpu.vector_store %arg8[%c0_14, %c0_15], %16 {strides = array<i32>} : memref<1x128xf32, #tpu.memory_space<vmem>>, vector<1x128xf32>,
    %c0_i32_16 = arith.constant 0 : i32
    %18 = arith.cmpi eq, %arg1, %c0_i32_16 : i32
    %19 = arith.extui %18 : i1 to i32
    %c0_i32_17 = arith.constant 0 : i32
    %20 = arith.cmpi ne, %19, %c0_i32_17 : i32
    scf.if %20 {
      %c0_18 = arith.constant 0 : index
      %c0_19 = arith.constant 0 : index
      %21 = vector.load %arg9[%c0_18, %c0_19] : memref<8x128xf32, #tpu.memory_space<vmem>>, vector<8x128xf32>
      %c0_20 = arith.constant 0 : index
      %c0_21 = arith.constant 0 : index
      %22 = vector.load %arg6[%c0_20, %c0_21] : memref<1x128xf32, #tpu.memory_space<vmem>>, vector<1x128xf32>
      %23 = vector.broadcast %22 : vector<1x128xf32> to vector<8x128xf32>
      %24 = arith.addf %21, %23 : vector<8x128xf32>
      %c0_22 = arith.constant 0 : index
      %c0_23 = arith.constant 0 : index
      %25 = vector.load %arg7[%c0_22, %c0_23] : memref<8x128xf32, #tpu.memory_space<vmem>>, vector<8x128xf32>
      tpu.vector_store %arg7[%c0_22, %c0_23], %24 {strides = array<i32>} : memref<8x128xf32, #tpu.memory_space<vmem>>, vector<8x128xf32>,
    } else {
    }
    return
  }
  func.func @transform_0(%arg0: i32, %arg1: i32) -> (i32, i32) {
    %c0_i32 = arith.constant 0 : i32
    %c0_i32_0 = arith.constant 0 : i32
    return %arg0, %c0_i32 : i32, i32
  }
  func.func @transform_1(%arg0: i32, %arg1: i32) -> (i32, i32) {
    %c0_i32 = arith.constant 0 : i32
    %c0_i32_0 = arith.constant 0 : i32
    return %c0_i32, %arg1 : i32, i32
  }
  func.func @transform_2(%arg0: i32, %arg1: i32) -> (i32, i32) {
    %c0_i32 = arith.constant 0 : i32
    %c0_i32_0 = arith.constant 0 : i32
    return %c0_i32, %arg1 : i32, i32
  }
  func.func @transform_3(%arg0: i32, %arg1: i32) -> (i32, i32) {
    %c0_i32 = arith.constant 0 : i32
    %c0_i32_0 = arith.constant 0 : i32
    return %arg1, %c0_i32 : i32, i32
  }
  func.func @transform_4(%arg0: i32, %arg1: i32) -> (i32, i32) {
    %c0_i32 = arith.constant 0 : i32
    %c0_i32_0 = arith.constant 0 : i32
    %c0_i32_1 = arith.constant 0 : i32
    return %c0_i32, %c0_i32_0 : i32, i32
  }
  func.func @transform_5(%arg0: i32, %arg1: i32) -> (i32, i32) {
    %c0_i32 = arith.constant 0 : i32
    %c0_i32_0 = arith.constant 0 : i32
    return %arg0, %c0_i32 : i32, i32
  }
  func.func @transform_6(%arg0: i32, %arg1: i32) -> (i32, i32) {
    %c0_i32 = arith.constant 0 : i32
    return %arg0, %arg1 : i32, i32
  }
}

</mosaic_0001>

<bundles_post_ra>
// kernel: tpu_custom_call.1
= control target key start
LH: loop header
LB: loop body
LE: loop exit
PB: predicated region body
PF: predicated region fallthrough
CT: control target
= control target key end

     0   :  { %12 = vsyncpa [#allocation4], 0  ;;  %s406_s0 = inlined_call_operand.hbm [shape: f32[8,128], index: 0, kind: input, shape index: {}]   ;;  %s407_s1 = inlined_call_operand.hbm [shape: f32[128,128], index: 1, kind: input, shape index: {}]   ;;  %s408_s2 = inlined_call_operand.vmem [shape: f32[1,128], index: 2, kind: input, shape index: {}]   ;;  %s409_s3 = inlined_call_operand.hbm [shape: f32[128,128], index: 3, kind: input, shape index: {}]   ;;  %s410_s4 = inlined_call_operand.vmem [shape: f32[1,128], index: 4, kind: input, shape index: {}]   ;;  %s411_s5 = inlined_call_operand.hbm [shape: f32[8,128], index: 5, kind: output, shape index: {0}]   ;;  %s412_s6 = inlined_call_operand.hbm [shape: f32[1,128], index: 6, kind: output, shape index: {1}]  }
   0x1   :  { %13 = vsyncpa [#allocation7], 0 }
   0x2   :  { %14 = vsyncpa [#allocation5], 0  ;;  %s31_s23 = sshll.u32 %s407_s1, 4  ;;  %s32_s23 = int_to_ptr.hbm [resolvable:$true] %s31_s23 }
   0x3   :  { %15 = vsyncpa [#allocation11], 0  ;;  %s343_s24 = smov [#allocation6]   ;;  %s21_s28 = sshll.u32 %s406_s0, 4  ;;  %s22_s28 = int_to_ptr.hbm [resolvable:$true] %s21_s28 }
   0x4   :  { %s33_s25 = sshll.u32 %s343_s24, 4  ;;  %s344_s29 = smov 128   ;;  %s34_s25 = int_to_ptr.vmem [resolvable:$true] %s33_s25 }
   0x5   :  { %s345_s30 = smov 8   ;;  %s346_s7 = smov [#allocation3]  }
   0x6   :  { %39 = dma.hbm_to_vmem [thread:$0]  %s32_s23, 2048, %s34_s25, [#allocation7], %s344_s29, %s344_s29, %s345_s30  }
   0x7   :  { %s23_s8 = sshll.u32 %s346_s7, 4  ;;  %s46_s11 = sshll.u32 %s409_s3, 4  ;;  %s24_s8 = int_to_ptr.vmem [resolvable:$true] %s23_s8  ;;  %s47_s11 = int_to_ptr.hbm [resolvable:$true] %s46_s11 }
   0x8   :  { %26 = dma.hbm_to_vmem [thread:$0]  %s22_s28, 128, %s24_s8, [#allocation4]  }
   0x9   :  { %s347_s1 = smov [#allocation8]  }
   0xa   :  { %s48_s12 = sshll.u32 %s347_s1, 4  ;;  %s49_s12 = int_to_ptr.vmem [resolvable:$true] %s48_s12 }
   0xb   :  { %54 = dma.hbm_to_vmem [thread:$0]  %s47_s11, 2048, %s49_s12, [#allocation7], %s344_s29, %s344_s29, %s345_s30  }
   0xc   :  { %335 = dma.done.wait [#allocation4], 128  }
   0xd   :  { %336 = vsyncadd [#allocation4], 4294967168 }
   0xe   :  { %337 = dma.done.wait [#allocation7], 4096  }
   0xf   :  { %338 = vsyncadd [#allocation7], 4294963200  ;;  %v90_v0 = vld [vmem:[#allocation6 + $0x78] sm:$0xff]  ;;  %v89_v1 = vld [vmem:[#allocation6 + $0x70] sm:$0xff]  ;;  %s348_s13 = smov [#allocation10]   ;;  %s190_s17 = sshll.u32 %s412_s6, 4  ;;  %s191_s17 = int_to_ptr.hbm [resolvable:$true] %s190_s17 }
  0x10   :  { %95 = vmatpush.msra.mxu0 %v90_v0  ;;  %v88_v2 = vld [vmem:[#allocation6 + $0x68] sm:$0xff]  ;;  %v87_v3 = vld [vmem:[#allocation6 + $0x60] sm:$0xff]  ;;  %v131_v4 = vld [vmem:[#allocation8 + $0x78] sm:$0xff]  ;;  %s188_s14 = sshll.u32 %s348_s13, 4  ;;  %s349_s19 = smov [#allocation9]   ;;  %s189_s14 = int_to_ptr.vmem [resolvable:$true] %s188_s14 }
  0x11   :  { %v86_v5 = vld [vmem:[#allocation6 + $0x58] sm:$0xff]  ;;  %132 = vmatpush.msra.mxu1 %v131_v4  ;;  %v130_v6 = vld [vmem:[#allocation8 + $0x70] sm:$0xff]  ;;  %v129_v7 = vld [vmem:[#allocation8 + $0x68] sm:$0xff]  ;;  %s177_s20 = sshll.u32 %s349_s19, 4  ;;  %s179_s23 = sshll.u32 %s411_s5, 4  ;;  %s178_s20 = int_to_ptr.vmem [resolvable:$true] %s177_s20  ;;  %s180_s23 = int_to_ptr.hbm [resolvable:$true] %s179_s23 }
  0x12   :  { %96 = vmatpush.msra.mxu0 %v89_v1  ;;  %v85_v8 = vld [vmem:[#allocation6 + $0x50] sm:$0xff]  ;;  %v128_v9 = vld [vmem:[#allocation8 + $0x60] sm:$0xff]  ;;  %v84_v10 = vld [vmem:[#allocation6 + $0x48] sm:$0xff] }
  0x13   :  { %133 = vmatpush.msra.mxu1 %v130_v6  ;;  %v127_v11 = vld [vmem:[#allocation8 + $0x58] sm:$0xff]  ;;  %v83_v12 = vld [vmem:[#allocation6 + $0x40] sm:$0xff]  ;;  %v126_v13 = vld [vmem:[#allocation8 + $0x50] sm:$0xff] }
  0x14   :  { %97 = vmatpush.msra.mxu0 %v88_v2  ;;  %v82_v14 = vld [vmem:[#allocation6 + $0x38] sm:$0xff]  ;;  %v125_v15 = vld [vmem:[#allocation8 + $0x48] sm:$0xff]  ;;  %v81_v16 = vld [vmem:[#allocation6 + $0x30] sm:$0xff] }
  0x15   :  { %134 = vmatpush.msra.mxu1 %v129_v7  ;;  %v124_v17 = vld [vmem:[#allocation8 + $0x40] sm:$0xff]  ;;  %v80_v18 = vld [vmem:[#allocation6 + $0x28] sm:$0xff]  ;;  %v123_v19 = vld [vmem:[#allocation8 + $0x38] sm:$0xff] }
  0x16   :  { %98 = vmatpush.msra.mxu0 %v87_v3  ;;  %v79_v20 = vld [vmem:[#allocation6 + $0x20] sm:$0xff]  ;;  %v122_v21 = vld [vmem:[#allocation8 + $0x30] sm:$0xff]  ;;  %v78_v22 = vld [vmem:[#allocation6 + $0x18] sm:$0xff] }
  0x17   :  { %135 = vmatpush.msra.mxu1 %v128_v9  ;;  %v121_v23 = vld [vmem:[#allocation8 + $0x28] sm:$0xff]  ;;  %v77_v24 = vld [vmem:[#allocation6 + $0x10] sm:$0xff]  ;;  %v120_v25 = vld [vmem:[#allocation8 + $0x20] sm:$0xff] }
  0x18   :  { %99 = vmatpush.msra.mxu0 %v86_v5  ;;  %v76_v26 = vld [vmem:[#allocation6 + $0x8] sm:$0xff]  ;;  %v119_v27 = vld [vmem:[#allocation8 + $0x18] sm:$0xff]  ;;  %v75_v28 = vld [vmem:[#allocation6] sm:$0xff] }
  0x19   :  { %136 = vmatpush.msra.mxu1 %v127_v11  ;;  %v74_v29 = vld [vmem:[#allocation3] sm:$0xff]  ;;  %v118_v30 = vld [vmem:[#allocation8 + $0x10] sm:$0xff]  ;;  %v117_v31 = vld [vmem:[#allocation8 + $0x8] sm:$0xff] }
  0x1a   :  { %100 = vmatpush.msra.mxu0 %v85_v8  ;;  %v116_v32 = vld [vmem:[#allocation8] sm:$0xff]  ;;  %v213_v33 = vld [vmem:[%s408_s2] ss:$0 sm:$0xff] }
  0x1b   :  { %137 = vmatpush.msra.mxu1 %v126_v13  ;;  %v214_v43 = vld [vmem:[%s410_s4] ss:$0 sm:$0xff] }
  0x1c   :  { %101 = vmatpush.msra.mxu0 %v84_v10 }
  0x1d   :  { %138 = vmatpush.msra.mxu1 %v125_v15 }
  0x1e   :  { %102 = vmatpush.msra.mxu0 %v83_v12 }
  0x1f   :  { %139 = vmatpush.msra.mxu1 %v124_v17 }
  0x20   :  { %103 = vmatpush.msra.mxu0 %v82_v14 }
  0x21   :  { %140 = vmatpush.msra.mxu1 %v123_v19 }
  0x22   :  { %104 = vmatpush.msra.mxu0 %v81_v16 }
  0x23   :  { %141 = vmatpush.msra.mxu1 %v122_v21 }
  0x24   :  { %105 = vmatpush.msra.mxu0 %v80_v18 }
  0x25   :  { %142 = vmatpush.msra.mxu1 %v121_v23 }
  0x26   :  { %106 = vmatpush.msra.mxu0 %v79_v20 }
  0x27   :  { %143 = vmatpush.msra.mxu1 %v120_v25 }
  0x28   :  { %107 = vmatpush.msra.mxu0 %v78_v22 }
  0x29   :  { %144 = vmatpush.msra.mxu1 %v119_v27 }
  0x2a   :  { %108 = vmatpush.msra.mxu0 %v77_v24 }
  0x2b   :  { %145 = vmatpush.msra.mxu1 %v118_v30 }
  0x2c   :  { %109 = vmatpush.msra.mxu0 %v76_v26 }
  0x2d   :  { %146 = vmatpush.msra.mxu1 %v117_v31 }
  0x2e   :  { %110 = vmatpush.msra.mxu0 %v75_v28 }
  0x2f   :  { %111 = vmatmul.f32.vlgmr.msra.gmra.mxu0 %v74_v29  ;;  %147 = vmatpush.msra.mxu1 %v116_v32 }
  0xac   :  { %v112_v34 = vpop.f32.mrf.mxu0 }
  0xad   :  { %v113_v35 = vadd.f32 %v213_v33, %v112_v34 }
  0xaf   :  { %v154_v36 = vand.u32 2147483647, %v113_v35  ;;  %148 = vmatmul.f32.vlgmr.msra.gmra.mxu1 %v113_v35 }
  0xb1   :  { %v155_v37 = vrot.slane %v154_v36, 4 }
  0xb3   :  { %v156_v38 = vadd.f32 %v155_v37, %v154_v36 }
  0xb5   :  { %v157_v39 = vrot.slane %v156_v38, 2 }
  0xb7   :  { %v158_v40 = vadd.f32 %v157_v39, %v156_v38 }
  0xb9   :  { %v159_v41 = vrot.slane %v158_v40, 1 }
  0xbb   :  { %v160_v42 = vadd.f32 %v159_v41, %v158_v40 }
  0xbd   :  { %161 = vst [vmem:[#allocation10] sm:$0x1] %v160_v42 }
  0xbe   :  { %193 = dma.vmem_to_hbm [thread:$0]  %s189_s14, 16, %s191_s17, [#allocation11]  }
 0x12c   :  { %v149_v44 = vpop.f32.mrf.mxu1 }
 0x12d   :  { %v170_v45 = vadd.f32 %v214_v43, %v149_v44 }
 0x12f   :  { %171 = vst [vmem:[#allocation9] sm:$0xff] %v170_v45 }
 0x130   :  { %182 = dma.vmem_to_hbm [thread:$0]  %s178_s20, 128, %s180_s23, [#allocation5]  }
 0x131   :  { %339 = dma.done.wait [#allocation5], 128  }
 0x132   :  { %340 = vsyncadd [#allocation5], 4294967168 }
 0x133   :  { %341 = dma.done.wait [#allocation11], 16  }
 0x134   :  { %342 = vsyncadd [#allocation11], 4294967280 }
 0x135   :  { %202 = vsyncpa [#allocation4], 1 }
 0x136   :  { %203 = vsyncpa [#allocation7], 1 }
 0x137   :  { %204 = vsyncpa [#allocation5], 1 }
 0x138   :  { %205 = vsyncpa [#allocation11], 1 }

</bundles_post_ra>
